<compile_context>
chip_gen: v6e
topology: v6e:2x2x1
jax: 0.10.0
libtpu: 0.0.40
codegen_flags: <defaults>
</compile_context>

<pallas_src>
import math
import functools

import jax
import jax.numpy as jnp
from jax.experimental import pallas as pl
from jax.experimental.pallas import tpu as pltpu


SQRT_HALF = math.sqrt(0.5)


def _round_up(n, m):
    return ((n + m - 1) // m) * m


def _tap_order(kernel_size):
    """Centre tap first (columns [:Cr] double as the residual input)."""
    kc = (kernel_size - 1) // 2
    return [kc] + [k for k in range(kernel_size) if k != kc]


def _wavenet_block_kernel(xin_ref, w1_ref, b1_ref, whead_ref, bhead_ref,
                          out_ref, *, cr, cgo):
    """One (time-tile, batch) block per grid step, (C, T) orientation.

    xin_ref  : (1, Kt, tT)  bf16  fused [x centre tap | other taps | cond c]
    w1_ref   : (Cg, Kt)     bf16  fused [w_conv taps | w_aux] (same row order)
    b1_ref   : (Cg, 1)      f32
    whead_ref: (Ch, Cgo)    bf16  fused rows [w_out*sqrt(.5) ; w_skip]
    bhead_ref: (Ch, 1)      f32   fused      [b_out*sqrt(.5) ; b_skip]
    out_ref  : (1, Ch, tT)  bf16  fused rows [residual out   ; skip out]
    """
    # Gate pre-activation: ONE MXU matmul over the fused K = ks*Cr + Ca axis,
    # f32 accumulation.
    acc = jnp.dot(w1_ref[...], xin_ref[0],
                  preferred_element_type=jnp.float32) + b1_ref[...]

    # Gated activation in f32 (v5e has no bf16 VPU/EUP path; free elsewhere).
    z = jnp.tanh(acc[:cgo, :]) * jax.nn.sigmoid(acc[cgo:, :])        # (Cgo, tT)

    # Fused residual/skip 1x1 head: one lane-dense (Ch, tT) matmul.
    head = jnp.dot(whead_ref[...], z.astype(jnp.bfloat16),
                   preferred_element_type=jnp.float32) + bhead_ref[...]

    # Residual add in f32 from the centre dilated-conv tap (rows [:cr] of the
    # fused input); w_out/b_out already carry the sqrt(0.5) factor.
    res_rows = head[:cr, :] + xin_ref[0, :cr, :].astype(jnp.float32) * SQRT_HALF
    out_ref[0, :cr, :] = res_rows.astype(out_ref.dtype)
    out_ref[0, cr:, :] = head[cr:, :].astype(out_ref.dtype)


def pack_params(params, *, kernel_size):
    """One-time repack of torch-layout Conv1d weights into fused matmul form.

    Call this once at model-load time; `wavenet_residual_block` consumes the
    packed dict (avoids re-emitting transpose/concat/cast HLOs per call).
    """
    order = _tap_order(kernel_size)
    w_conv = params["w_conv"]                                   # (Cg, Cr, ks)
    taps = [w_conv[:, :, k] for k in order]                     # each (Cg, Cr)
    w1 = jnp.concatenate(taps + [params["w_aux"][:, :, 0]], axis=1)
    b1 = params["b_conv"].astype(jnp.float32)[:, None]          # (Cg, 1)
    w_out = params["w_out"][:, :, 0] * SQRT_HALF                # (Cr, Cgo)
    w_skip = params["w_skip"][:, :, 0]                          # (Cs, Cgo)
    whead = jnp.concatenate([w_out, w_skip], axis=0)            # (Cr+Cs, Cgo)
    bhead = jnp.concatenate(
        [params["b_out"] * SQRT_HALF, params["b_skip"]]).astype(
            jnp.float32)[:, None]                               # (Cr+Cs, 1)
    return {
        "w1": w1.astype(jnp.bfloat16),
        "b1": b1,
        "whead": whead.astype(jnp.bfloat16),
        "bhead": bhead,
    }


def wavenet_residual_block(x, c, packed, *, kernel_size=3, dilation=1,
                           time_tile=2048, out_dtype=jnp.bfloat16):
    """Pallas forward of WaveNetResidualBlock (non-causal, dropout p=0.0).

    x: (B, residual_channels, T)   c: (B, aux_channels, T)   (PyTorch NCW)
    packed: output of pack_params(params, kernel_size=kernel_size)
    returns (res, skip) with shapes (B, Cr, T), (B, Cs, T) in `out_dtype`.
    """
    assert (kernel_size - 1) % 2 == 0, "even kernel_size not supported"
    B, Cr, T = x.shape
    Ca = c.shape[1]
    pad = (kernel_size - 1) // 2 * dilation

    Cg = packed["w1"].shape[0]
    Cgo = Cg // 2
    Ch = packed["whead"].shape[0]                 # Cr + Cs
    Kt = kernel_size * Cr + Ca

    # Lane-dim (time) tile: multiple of 128, capped near T to limit padded
    # waste at small T.
    tT = min(_round_up(time_tile, 128), _round_up(T, 128))
    Tp = _round_up(T, tT)
    nT = Tp // tT

    # Fused activation input in NCW orientation (channels on sublanes, time on
    # the 128-lane axis): [x centre tap | other dilated taps | conditioning].
    # No NCW<->NTC transposes; the centre tap doubles as the residual input.
    x_bf = x.astype(jnp.bfloat16)
    c_bf = c.astype(jnp.bfloat16)
    xp = jnp.pad(x_bf, ((0, 0), (0, 0), (pad, pad + Tp - T)))   # (B,Cr,Tp+2p)
    taps = [xp[:, :, k * dilation:k * dilation + Tp]
            for k in _tap_order(kernel_size)]
    c_p = jnp.pad(c_bf, ((0, 0), (0, 0), (0, Tp - T)))          # (B, Ca, Tp)
    xin = jnp.concatenate(taps + [c_p], axis=1)                 # (B, Kt, Tp)
    # TODO(synk): for a fully streaming variant, the tap stacking above could
    # be replaced by an in-kernel halo DMA (memory_space=pl.ANY) to avoid the
    # ks-times-wider intermediate write/read.

    # Right-size the VMEM limit from the actual per-step footprint
    # (double-buffered bf16 in/out tiles + weights + f32 intermediates).
    in_bytes = Kt * tT * 2
    out_bytes = Ch * tT * jnp.dtype(out_dtype).itemsize
    w_bytes = (Cg * Kt + Ch * Cgo) * 2 + (Cg + Ch) * 4
    vmem_limit = 2 * (in_bytes + out_bytes) + w_bytes + 8 * Cg * tT * 4
    vmem_limit = int(min(64 << 20, max(16 << 20, vmem_limit + (8 << 20))))

    kernel = functools.partial(_wavenet_block_kernel, cr=Cr, cgo=Cgo)

    out = pl.pallas_call(
        kernel,
        out_shape=jax.ShapeDtypeStruct((B, Ch, Tp), out_dtype),
        grid=(nT, B),                      # time leading: balances 2-TC v7x
        in_specs=[
            pl.BlockSpec((1, Kt, tT), lambda t, b: (b, 0, t)),
            pl.BlockSpec((Cg, Kt), lambda t, b: (0, 0)),
            pl.BlockSpec((Cg, 1), lambda t, b: (0, 0)),
            pl.BlockSpec((Ch, Cgo), lambda t, b: (0, 0)),
            pl.BlockSpec((Ch, 1), lambda t, b: (0, 0)),
        ],
        out_specs=pl.BlockSpec((1, Ch, tT), lambda t, b: (b, 0, t)),
        compiler_params=pltpu.CompilerParams(
            dimension_semantics=("parallel", "parallel"),
            vmem_limit_bytes=vmem_limit),
    )(xin, packed["w1"], packed["b1"], packed["whead"], packed["bhead"])

    res = out[:, :Cr, :T]
    skip = out[:, Cr:, :T]
    return res, skip


def init_params(key, *, kernel_size, residual_channels, gate_channels,
                skip_channels, aux_channels):
    """Deterministic kaiming-normal-style init (matches the module's shapes)."""
    ks = kernel_size
    k1, k2, k3, k4 = jax.random.split(key, 4)

    def kaiming(k, shape, fan_in):
        return jax.random.normal(k, shape, jnp.float32) * math.sqrt(2.0 / fan_in)

    return {
        # torch Conv1d weight layout: (out, in, kernel)
        "w_conv": kaiming(k1, (gate_channels, residual_channels, ks),
                          residual_channels * ks),
        "b_conv": jnp.zeros((gate_channels,), jnp.float32),
        "w_aux": kaiming(k2, (gate_channels, aux_channels, 1), aux_channels),
        "w_out": kaiming(k3, (residual_channels, gate_channels // 2, 1),
                         gate_channels // 2),
        "b_out": jnp.zeros((residual_channels,), jnp.float32),
        "w_skip": kaiming(k4, (skip_channels, gate_channels // 2, 1),
                          gate_channels // 2),
        "b_skip": jnp.zeros((skip_channels,), jnp.float32),
    }


def _reference(x, c, params, *, kernel_size, dilation):
    """Pure-JAX f32 reference of the PyTorch forward (correctness check)."""
    pad = (kernel_size - 1) // 2 * dilation
    y = jax.lax.conv_general_dilated(
        x, params["w_conv"], window_strides=(1,), padding=[(pad, pad)],
        rhs_dilation=(dilation,), dimension_numbers=("NCH", "OIH", "NCH"))
    y = y + params["b_conv"][None, :, None]
    cy = jax.lax.conv_general_dilated(
        c, params["w_aux"], window_strides=(1,), padding=[(0, 0)],
        dimension_numbers=("NCH", "OIH", "NCH"))
    Cg = y.shape[1]
    xa, xb = y[:, :Cg // 2], y[:, Cg // 2:]
    ca, cb = cy[:, :Cg // 2], cy[:, Cg // 2:]
    xa, xb = xa + ca, xb + cb
    z = jnp.tanh(xa) * jax.nn.sigmoid(xb)
    s = jax.lax.conv_general_dilated(
        z, params["w_skip"], (1,), [(0, 0)],
        dimension_numbers=("NCH", "OIH", "NCH")) + params["b_skip"][None, :, None]
    o = jax.lax.conv_general_dilated(
        z, params["w_out"], (1,), [(0, 0)],
        dimension_numbers=("NCH", "OIH", "NCH")) + params["b_out"][None, :, None]
    o = (o + x) * math.sqrt(0.5)
    return o, s


if __name__ == "__main__":
    # Small shapes consistent with the module defaults (scaled time axis).
    B, T = 2, 64
    kernel_size, dilation = 3, 2
    residual_channels, gate_channels = 64, 128
    skip_channels, aux_channels = 64, 80

    key = jax.random.PRNGKey(0)
    kx, kc, kp = jax.random.split(key, 3)
    x = jax.random.normal(kx, (B, residual_channels, T), jnp.float32)
    c = jax.random.normal(kc, (B, aux_channels, T), jnp.float32)
    params = init_params(kp, kernel_size=kernel_size,
                         residual_channels=residual_channels,
                         gate_channels=gate_channels,
                         skip_channels=skip_channels,
                         aux_channels=aux_channels)

    packed = pack_params(params, kernel_size=kernel_size)   # once, at load time
    res, skip = wavenet_residual_block(x, c, packed,
                                       kernel_size=kernel_size,
                                       dilation=dilation)
    jax.block_until_ready((res, skip))

    # Cross-check against a pure-JAX f32 reference of the PyTorch semantics
    # (tolerances loosened for the bf16 matmul / bf16-output path).
    res_ref, skip_ref = _reference(x, c, params,
                                   kernel_size=kernel_size, dilation=dilation)
    assert res.shape == (B, residual_channels, T)
    assert skip.shape == (B, skip_channels, T)
    assert jnp.allclose(res.astype(jnp.float32), res_ref, rtol=5e-2, atol=5e-2)
    assert jnp.allclose(skip.astype(jnp.float32), skip_ref, rtol=5e-2, atol=5e-2)

    print("KERNEL_OK")
</pallas_src>

<mosaic_0001>
module attributes {stable_mosaic.version = 11 : i64} {
  func.func @_wavenet_block_kernel(%arg0: i32, %arg1: i32, %arg2: memref<1x272x128xbf16, #tpu.memory_space<vmem>>, %arg3: memref<128x272xbf16, #tpu.memory_space<vmem>>, %arg4: memref<128x1xf32, #tpu.memory_space<vmem>>, %arg5: memref<128x64xbf16, #tpu.memory_space<vmem>>, %arg6: memref<128x1xf32, #tpu.memory_space<vmem>>, %arg7: memref<1x128x128xbf16, #tpu.memory_space<vmem>>) attributes {dimension_semantics = [#tpu.dimension_semantics<parallel>, #tpu.dimension_semantics<parallel>], iteration_bounds = array<i64: 1, 2>, scalar_prefetch = 0 : i64, scratch_operands = 0 : i64, tpu.core_type = #tpu.core_type<tc>, window_params = [{transform_indices = @transform_0, window_bounds = array<i64: 1, 272, 128>}, {pipeline_mode = #tpu.pipeline_mode<synchronous>, transform_indices = @transform_1, window_bounds = array<i64: 128, 272>}, {pipeline_mode = #tpu.pipeline_mode<synchronous>, transform_indices = @transform_2, window_bounds = array<i64: 128, 1>}, {pipeline_mode = #tpu.pipeline_mode<synchronous>, transform_indices = @transform_3, window_bounds = array<i64: 128, 64>}, {pipeline_mode = #tpu.pipeline_mode<synchronous>, transform_indices = @transform_4, window_bounds = array<i64: 128, 1>}, {transform_indices = @transform_5, window_bounds = array<i64: 1, 128, 128>}]} {
    %c0 = arith.constant 0 : index
    %c0_0 = arith.constant 0 : index
    %0 = vector.load %arg3[%c0, %c0_0] : memref<128x272xbf16, #tpu.memory_space<vmem>>, vector<128x272xbf16>
    %c0_1 = arith.constant 0 : index
    %c0_2 = arith.constant 0 : index
    %c0_3 = arith.constant 0 : index
    %1 = vector.load %arg2[%c0_1, %c0_2, %c0_3] : memref<1x272x128xbf16, #tpu.memory_space<vmem>>, vector<1x272x128xbf16>
    %2 = vector.shape_cast %1 : vector<1x272x128xbf16> to vector<272x128xbf16>
    %cst = arith.constant dense<0.000000e+00> : vector<128x128xf32>
    %3 = tpu.matmul %0, %2, %cst {dimension_numbers = #tpu.dot_dimension_numbers<[1], [0], [0], [1], [0, 0, 1, 1], [], []>} : vector<128x272xbf16>, vector<272x128xbf16>, vector<128x128xf32> -> vector<128x128xf32>
    %c0_4 = arith.constant 0 : index
    %c0_5 = arith.constant 0 : index
    %4 = vector.load %arg4[%c0_4, %c0_5] : memref<128x1xf32, #tpu.memory_space<vmem>>, vector<128x1xf32>
    %5 = vector.broadcast %4 : vector<128x1xf32> to vector<128x128xf32>
    %6 = arith.addf %3, %5 : vector<128x128xf32>
    %7 = vector.extract_strided_slice %6 {offsets = [0, 0], sizes = [64, 128], strides = [1, 1]} : vector<128x128xf32> to vector<64x128xf32>
    %8 = math.tanh %7 : vector<64x128xf32>
    %9 = vector.extract_strided_slice %6 {offsets = [64, 0], sizes = [64, 128], strides = [1, 1]} : vector<128x128xf32> to vector<64x128xf32>
    %10 = arith.negf %9 : vector<64x128xf32>
    %11 = math.exp %10 : vector<64x128xf32>
    %cst_6 = arith.constant 1.000000e+00 : f32
    %12 = vector.broadcast %cst_6 : f32 to vector<64x128xf32>
    %13 = arith.addf %12, %11 : vector<64x128xf32>
    %14 = arith.divf %12, %13 : vector<64x128xf32>
    %15 = arith.mulf %8, %14 : vector<64x128xf32>
    %c0_7 = arith.constant 0 : index
    %c0_8 = arith.constant 0 : index
    %16 = vector.load %arg5[%c0_7, %c0_8] : memref<128x64xbf16, #tpu.memory_space<vmem>>, vector<128x64xbf16>
    %17 = arith.truncf %15 : vector<64x128xf32> to vector<64x128xbf16>
    %cst_9 = arith.constant dense<0.000000e+00> : vector<128x128xf32>
    %18 = tpu.matmul %16, %17, %cst_9 {dimension_numbers = #tpu.dot_dimension_numbers<[1], [0], [0], [1], [0, 0, 1, 1], [], []>} : vector<128x64xbf16>, vector<64x128xbf16>, vector<128x128xf32> -> vector<128x128xf32>
    %c0_10 = arith.constant 0 : index
    %c0_11 = arith.constant 0 : index
    %19 = vector.load %arg6[%c0_10, %c0_11] : memref<128x1xf32, #tpu.memory_space<vmem>>, vector<128x1xf32>
    %20 = vector.broadcast %19 : vector<128x1xf32> to vector<128x128xf32>
    %21 = arith.addf %18, %20 : vector<128x128xf32>
    %22 = vector.extract_strided_slice %21 {offsets = [0, 0], sizes = [64, 128], strides = [1, 1]} : vector<128x128xf32> to vector<64x128xf32>
    %c0_12 = arith.constant 0 : index
    %c0_13 = arith.constant 0 : index
    %c0_14 = arith.constant 0 : index
    %23 = vector.load %arg2[%c0_12, %c0_13, %c0_14] : memref<1x272x128xbf16, #tpu.memory_space<vmem>>, vector<1x64x128xbf16>
    %24 = vector.shape_cast %23 : vector<1x64x128xbf16> to vector<64x128xbf16>
    %25 = arith.extf %24 : vector<64x128xbf16> to vector<64x128xf32>
    %cst_15 = arith.constant 0.707106769 : f32
    %26 = vector.broadcast %cst_15 : f32 to vector<64x128xf32>
    %27 = arith.mulf %25, %26 : vector<64x128xf32>
    %28 = arith.addf %22, %27 : vector<64x128xf32>
    %29 = arith.truncf %28 : vector<64x128xf32> to vector<64x128xbf16>
    %c0_16 = arith.constant 0 : index
    %c0_17 = arith.constant 0 : index
    %c0_18 = arith.constant 0 : index
    %30 = vector.load %arg7[%c0_16, %c0_17, %c0_18] : memref<1x128x128xbf16, #tpu.memory_space<vmem>>, vector<1x64x128xbf16>
    %31 = vector.shape_cast %30 : vector<1x64x128xbf16> to vector<64x128xbf16>
    %32 = vector.shape_cast %29 : vector<64x128xbf16> to vector<1x64x128xbf16>
    tpu.vector_store %arg7[%c0_16, %c0_17, %c0_18], %32 {strides = array<i32>} : memref<1x128x128xbf16, #tpu.memory_space<vmem>>, vector<1x64x128xbf16>,
    %33 = vector.extract_strided_slice %21 {offsets = [64, 0], sizes = [64, 128], strides = [1, 1]} : vector<128x128xf32> to vector<64x128xf32>
    %34 = arith.truncf %33 : vector<64x128xf32> to vector<64x128xbf16>
    %c0_19 = arith.constant 0 : index
    %c64 = arith.constant 64 : index
    %c0_20 = arith.constant 0 : index
    %35 = vector.load %arg7[%c0_19, %c64, %c0_20] : memref<1x128x128xbf16, #tpu.memory_space<vmem>>, vector<1x64x128xbf16>
    %36 = vector.shape_cast %35 : vector<1x64x128xbf16> to vector<64x128xbf16>
    %37 = vector.shape_cast %34 : vector<64x128xbf16> to vector<1x64x128xbf16>
    tpu.vector_store %arg7[%c0_19, %c64, %c0_20], %37 {strides = array<i32>} : memref<1x128x128xbf16, #tpu.memory_space<vmem>>, vector<1x64x128xbf16>,
    return
  }
  func.func @transform_0(%arg0: i32, %arg1: i32) -> (i32, i32, i32) {
    %c0_i32 = arith.constant 0 : i32
    %c0_i32_0 = arith.constant 0 : i32
    return %arg1, %c0_i32, %arg0 : i32, i32, i32
  }
  func.func @transform_1(%arg0: i32, %arg1: i32) -> (i32, i32) {
    %c0_i32 = arith.constant 0 : i32
    %c0_i32_0 = arith.constant 0 : i32
    %c0_i32_1 = arith.constant 0 : i32
    return %c0_i32, %c0_i32_0 : i32, i32
  }
  func.func @transform_2(%arg0: i32, %arg1: i32) -> (i32, i32) {
    %c0_i32 = arith.constant 0 : i32
    %c0_i32_0 = arith.constant 0 : i32
    %c0_i32_1 = arith.constant 0 : i32
    return %c0_i32, %c0_i32_0 : i32, i32
  }
  func.func @transform_3(%arg0: i32, %arg1: i32) -> (i32, i32) {
    %c0_i32 = arith.constant 0 : i32
    %c0_i32_0 = arith.constant 0 : i32
    %c0_i32_1 = arith.constant 0 : i32
    return %c0_i32, %c0_i32_0 : i32, i32
  }
  func.func @transform_4(%arg0: i32, %arg1: i32) -> (i32, i32) {
    %c0_i32 = arith.constant 0 : i32
    %c0_i32_0 = arith.constant 0 : i32
    %c0_i32_1 = arith.constant 0 : i32
    return %c0_i32, %c0_i32_0 : i32, i32
  }
  func.func @transform_5(%arg0: i32, %arg1: i32) -> (i32, i32, i32) {
    %c0_i32 = arith.constant 0 : i32
    %c0_i32_0 = arith.constant 0 : i32
    return %arg1, %c0_i32, %arg0 : i32, i32, i32
  }
}

</mosaic_0001>

<bundles_post_ra>
// kernel: tpu_custom_call.1
= control target key start
LH: loop header
LB: loop body
LE: loop exit
PB: predicated region body
PF: predicated region fallthrough
CT: control target
= control target key end

     0   :  { %10 = vsyncpa [#allocation3], 0  ;;  %s2429_s0 = inlined_call_operand.vmem [shape: bf16[2,272,128], index: 0, kind: input, shape index: {}]   ;;  %s2430_s1 = inlined_call_operand.vmem [shape: bf16[128,272], index: 1, kind: input, shape index: {}]   ;;  %s2431_s2 = inlined_call_operand.vmem [shape: f32[128,1], index: 2, kind: input, shape index: {}]   ;;  %s2432_s3 = inlined_call_operand.vmem [shape: bf16[128,64], index: 3, kind: input, shape index: {}]   ;;  %s2433_s4 = inlined_call_operand.vmem [shape: f32[128,1], index: 4, kind: input, shape index: {}]   ;;  %s2434_s5 = inlined_call_operand.hbm [shape: bf16[2,128,128], index: 5, kind: output, shape index: {}]  }
   0x1   :  { %12 = vsyncpa [#allocation3 + $0x1], 0  ;;  %s1988_s18 = smov 0   ;;  %s1990_s19 = smov 0  }
   0x2   :  { %s1992_s20 = smov 0   ;;  %s1994_s21 = smov 0  }
   0x3   :  { %s1996_s22 = smov 0   ;;  %s1998_s23 = smov 0  }
   0x4 LB: > { %s1399_s24 = sadd.s32 4294967295, %s1952_s23   ;;  %s1400_s25 = sadd.s32 4294967294, %s1952_s23   ;;  %s1952_s23 = sphi %s1998_s23, %s18_s23   ;;  %s1948_s22 = sphi %s1996_s22, %s2441_s22   ;;  %s1944_s21 = sphi %s1994_s21, %s2440_s21   ;;  %s1940_s20 = sphi %s1992_s20, %s2439_s20   ;;  %s1936_s19 = sphi %s1990_s19, %s2438_s19   ;;  %s1932_s18 = sphi %s1988_s18, %s2437_s18  }
   0x5   : > { %s27_s26 = sadd.s32 1, %s1948_s22  ;;  %s151_s27 = sadd.s32 1, %s1940_s20 }
   0x6   : > { %p28_p0 = scmp.ge.s32.totalorder %s27_s26, 2  ;;  %p161_p1 = scmp.ne.s32.totalorder %s1940_s20, %s1936_s19 }
   0x7   : > { %p162_p2 = scmp.eq.s32.totalorder %s1399_s24, 1  ;;  %p167_p3 = scmp.ne.s32.totalorder %s1936_s19, %s1932_s18 }
   0x8   : > { %s2443_s26 = smov (%p28_p0, %s27_s26), 0  ;;  %p168_p5 = scmp.eq.s32.totalorder %s1400_s25, 1 }
   0x9   : > { %p2028_p4 = por %p162_p2, %p161_p1  ;;  %s146_s29 = ssub.s32 %s1948_s22, %s2443_s26 }
   0xa   : > { %p1403_p6 = scmp.ge.s32.totalorder %s1952_s23, 1  ;;  %p149_p7 = scmp.eq.s32.totalorder %s146_s29, 0 }
   0xb   : > { %p2035_p8 = por %p168_p5, %p167_p3  ;;  %p209_p9 = scmp.lt.s32.totalorder %s1952_s23, 3 }
   0xc   : > { %s2041_s6 = scalar_select %p149_p7, %s1940_s20, %s151_s27  }
   0xd   : > { %p210_p10 = pnand %p1403_p6, %p209_p9 }
   0xe   : > { %p240_p11 = scmp.lt.s32.totalorder (!%p210_p10), %s1944_s21, 1  ;;  %s237_s13 = sand.u32 (!%p210_p10), 1, %s1936_s19  }
   0xf   : > { %213 = sbr.rel (%p210_p10) target bundleno = 613 (0x265), region = 40  ;;  %s1404_s14 = sshll.u32 (!%p210_p10), %s237_s13, 6 }
  0x10   : > { %s2363_s16 = scalar_lea.vmem (!%p210_p10), [#allocation2], %s1404_s14  ;;  %s1955_s7 = smov (!%p210_p10), [#allocation2]  }
  0x11   : > { %s1321_s17 = sshll.u32 (!%p210_p10), %s2363_s16, 4  ;;  %s1880_s8 = sshll.u32 (!%p210_p10), %s1955_s7, 4  ;;  %s2378_s17 = int_to_ptr.vmem [resolvable:$true] %s1321_s17  ;;  %s1881_s8 = int_to_ptr.vmem [resolvable:$false] %s1880_s8 }
  0x12   : > { %s1876_s29 = scalar_lea.vmem (!%p210_p10), %s2378_s17, 1024  ;;  %p1883_p1 = scmp.lt.s32.totalorder (!%p210_p10), %s2378_s17, %s1881_s8 }
  0x13   : > { %p1877_p12 = scmp.ne.s32.totalorder (!%p210_p10), %s2378_s17, %s1876_s29 }
  0x14   : > { %vm633_vm0 = vcmask 130048   ;;  %v1789_v0 = vld [vmem:[%s2430_s1 + $0x4] ss:$12 sps:$4 sm:$0xff]   ;;  %s241_s9 = scalar_select %p240_p11, %s1944_s21, 1  ;;  %v1791_v1 = vld [vmem:[%s2430_s1 + $0x8] ss:$12 sps:$4 sm:$0xff]  }
  0x15   : > { %690 = vmatprep.mubr.bf16.mxu0 %v1789_v0  ;;  %1670 = vmatprep.mubr.msk.bf16.mxu1 %vm633_vm0, %v1791_v1  ;;  %v1954_v2 = vmov 0   ;;  %v1792_v15 = vld [vmem:[%s2430_s1 + $0x20] ss:$12 sps:$4 sm:$0xff]   ;;  %v1799_v16 = vld [vmem:[%s2430_s1 + $0x38] ss:$12 sps:$4 sm:$0xff]   ;;  %v329_v21 = vld [vmem:[%s2431_s2 + $0x70] sm:$0xff]  ;;  %p1878_p13 = pnand %p1877_p12, %p2028_p4 }
  0x16   : > { %s1710_s12 = smul.u32 136, %s241_s9  ;;  %1769 = vset.pattern.permute.xlu0 %v1954_v2  ;;  %1770 = vset.pattern.permute.xlu1 %v1954_v2  ;;  %v1800_v23 = vld [vmem:[%s2430_s1 + $0x50] ss:$12 sps:$4 sm:$0xff]   ;;  %v327_v25 = vld [vmem:[%s2431_s2 + $0x60] sm:$0xff]  ;;  %v1807_v26 = vld [vmem:[%s2430_s1 + $0x68] ss:$12 sps:$4 sm:$0xff]  }
  0x17   : > { %403 = vperm.xlu0 %1769, %v329_v21   ;;  %v330_v24 = vld [vmem:[%s2431_s2 + $0x78] sm:$0xff]  ;;  %393 = vperm.xlu1 %1770, %v327_v25   ;;  %v328_v27 = vld [vmem:[%s2431_s2 + $0x68] sm:$0xff]  ;;  %v325_v29 = vld [vmem:[%s2431_s2 + $0x50] sm:$0xff]  ;;  %vm1072_vm1 = vcmask 523264   ;;  %p1879_p0 = pneg %p1878_p13  ;;  %s1882_s9 = scalar_lea.vmem %s1881_s8, 2048 }
  0x18   : > { %s2055_s15 = scalar_lea.vmem %s2429_s0, %s1710_s12  ;;  %v1787_v28 = vld [vmem:[%s2430_s1] ss:$12 sps:$4 sm:$0xff]   ;;  %v1793_v30 = vld [vmem:[%s2430_s1 + $0x1c] ss:$12 sps:$4 sm:$0xff]   ;;  %v1815_v34 = vld [vmem:[%s2430_s1 + $0x98] ss:$12 sps:$4 sm:$0xff]   ;;  %p1884_p2 = scmp.lt.s32.totalorder %s1882_s9, %s1876_s29 }
  0x19   : > { %v1771_v3 = vld [vmem:[%s2055_s15 + $0x78] sm:$0xff]   ;;  %v1773_v5 = vld [vmem:[%s2055_s15 + $0x70] sm:$0xff]   ;;  %v1775_v7 = vld [vmem:[%s2055_s15 + $0x68] sm:$0xff]  }
  0x1a   : > { %v1772_v4 = vld [vmem:[%s2055_s15 + $0x38] sm:$0xff]   ;;  %1583 = vmatprep.subr.bf16.mxu0 %v1771_v3  ;;  %v1774_v6 = vld [vmem:[%s2055_s15 + $0x30] sm:$0xff]   ;;  %v1776_v8 = vld [vmem:[%s2055_s15 + $0x28] sm:$0xff]   ;;  %p1885_p3 = por %p1884_p2, %p1883_p1 }
  0x1b   : > { %1584 = vmatpush3.bf16.msra.mxu0 %v1772_v4  ;;  %v1777_v9 = vld [vmem:[%s2055_s15 + $0x60] sm:$0xff]   ;;  %v1779_v11 = vld [vmem:[%s2055_s15 + $0x58] sm:$0xff]   ;;  %v1781_v13 = vld [vmem:[%s2055_s15 + $0x50] sm:$0xff]   ;;  %408 = vperm.xlu0 %1769, %v330_v24  }
  0x1c   : > { %1585 = vmatprep.subr.bf16.mxu0 %v1773_v5  ;;  %v1778_v10 = vld [vmem:[%s2055_s15 + $0x20] sm:$0xff]   ;;  %v1780_v12 = vld [vmem:[%s2055_s15 + $0x18] sm:$0xff]   ;;  %v1782_v17 = vld [vmem:[%s2055_s15 + $0x10] sm:$0xff]   ;;  %398 = vperm.xlu1 %1770, %v328_v27   ;;  %p1886_p5 = pnand %p1885_p3, %p1879_p0 }
  0x1d   : > { %v1790_v14 = vld [vmem:[%s2055_s15 + $0x80] sm:$0xff]   ;;  %v1783_v18 = vld [vmem:[%s2055_s15 + $0x48] sm:$0xff]   ;;  %v326_v31 = vld [vmem:[%s2431_s2 + $0x58] sm:$0xff] }
  0x1e   : > { %1668 = vmatprep.subr.bf16.mxu1 %v1790_v14  ;;  %v1784_v19 = vld [vmem:[%s2055_s15 + $0x8] sm:$0xff]   ;;  %v1785_v20 = vld [vmem:[%s2055_s15 + $0x40] sm:$0xff]   ;;  %v321_v38 = vld [vmem:[%s2431_s2 + $0x30] sm:$0xff] }
  0x1f   : > { %1586 = vmatpush3.bf16.msra.mxu0 %v1774_v6  ;;  %1669 = vmatpush3.bf16.msra.mxu1 %v1790_v14  ;;  %v1786_v22 = vld [vmem:[%s2055_s15] sm:$0xff]   ;;  %v324_v35 = vld [vmem:[%s2431_s2 + $0x48] sm:$0xff]  ;;  %v322_v39 = vld [vmem:[%s2431_s2 + $0x38] sm:$0xff] }
  0x20   : > { %1587 = vmatprep.subr.bf16.mxu0 %v1775_v7  ;;  %383 = vperm.xlu0 %1769, %v325_v29   ;;  %v1808_v32 = vld [vmem:[%s2430_s1 + $0x80] ss:$12 sps:$4 sm:$0xff]   ;;  %v1795_v36 = vld [vmem:[%s2430_s1 + $0x18] ss:$12 sps:$4 sm:$0xff]   ;;  %v1816_v40 = vld [vmem:[%s2430_s1 + $0xb0] ss:$12 sps:$4 sm:$0xff]  }
  0x21   : > { %v323_v33 = vld [vmem:[%s2431_s2 + $0x40] sm:$0xff]  ;;  %388 = vperm.xlu1 %1770, %v326_v31   ;;  %v320_v42 = vld [vmem:[%s2431_s2 + $0x28] sm:$0xff]  ;;  %v1798_v43 = vld [vmem:[%s2430_s1 + $0x30] ss:$12 sps:$4 sm:$0xff]  }
  0x22   : > { %1671 = vmatmul.mubr.msk.bf16.vlgmr.msra.gmra.mxu1 %vm633_vm0, %v1792_v15  ;;  %v1796_v37 = vld [vmem:[%s2430_s1 + $0x34] ss:$12 sps:$4 sm:$0xff]   ;;  %v1801_v45 = vld [vmem:[%s2430_s1 + $0x4c] ss:$12 sps:$4 sm:$0xff]   ;;  %v1804_v51 = vld [vmem:[%s2430_s1 + $0x64] ss:$12 sps:$4 sm:$0xff]  }
  0x23   : > { %1588 = vmatpush3.bf16.msra.mxu0 %v1776_v8  ;;  %1674 = vmatprep.mubr.msk.bf16.mxu1 %vm633_vm0, %v1799_v16  ;;  %v319_v41 = vld [vmem:[%s2431_s2 + $0x20] sm:$0xff]  ;;  %v317_v44 = vld [vmem:[%s2431_s2 + $0x10] sm:$0xff]  ;;  %v318_v46 = vld [vmem:[%s2431_s2 + $0x18] sm:$0xff] }
  0x24   : > { %1589 = vmatprep.subr.bf16.mxu0 %v1777_v9  ;;  %373 = vperm.xlu0 %1769, %v323_v33   ;;  %v315_v47 = vld [vmem:[%s2431_s2] sm:$0xff]  ;;  %v316_v48 = vld [vmem:[%s2431_s2 + $0x8] sm:$0xff]  ;;  %v938_v53 = vld [vmem:[%s2433_s4 + $0x10] sm:$0xff] }
  0x25   : > { %378 = vperm.xlu1 %1770, %v324_v35   ;;  %v1803_v49 = vld [vmem:[%s2430_s1 + $0x48] ss:$12 sps:$4 sm:$0xff]   ;;  %v936_v50 = vld [vmem:[%s2433_s4] sm:$0xff]  ;;  %v939_v54 = vld [vmem:[%s2433_s4 + $0x18] sm:$0xff] }
  0x26   : > { %v937_v52 = vld [vmem:[%s2433_s4 + $0x8] sm:$0xff]  ;;  %v940_v56 = vld [vmem:[%s2433_s4 + $0x20] sm:$0xff]  ;;  %v942_v59 = vld [vmem:[%s2433_s4 + $0x30] sm:$0xff] }
  0x27   : > { %1590 = vmatpush3.bf16.msra.mxu0 %v1778_v10  ;;  %v1806_v55 = vld [vmem:[%s2430_s1 + $0x60] ss:$12 sps:$4 sm:$0xff]   ;;  %v1809_v57 = vld [vmem:[%s2430_s1 + $0x7c] ss:$12 sps:$4 sm:$0xff]   ;;  %v1811_v61 = vld [vmem:[%s2430_s1 + $0x78] ss:$12 sps:$4 sm:$0xff]  }
  0x28   : > { %1591 = vmatprep.subr.bf16.mxu0 %v1779_v11  ;;  %363 = vperm.xlu0 %1769, %v321_v38   ;;  %v941_v58 = vld [vmem:[%s2433_s4 + $0x28] sm:$0xff]  ;;  %v943_v60 = vld [vmem:[%s2433_s4 + $0x38] sm:$0xff]  ;;  %v944_v62 = vld [vmem:[%s2433_s4 + $0x40] sm:$0xff] }
  0x29   : > { %368 = vperm.xlu1 %1770, %v322_v39   ;;  %v1812_v63 = vld [vmem:[%s2430_s1 + $0x94] ss:$12 sps:$4 sm:$0xff]   ;;  %v945_v0 = vld [vmem:[%s2433_s4 + $0x48] sm:$0xff]  ;;  %v947_v2 = vld [vmem:[%s2433_s4 + $0x58] sm:$0xff] }
  0x2a   : > { %1675 = vmatmul.mubr.msk.bf16.gmra.mxu1 %vm633_vm0, %v1800_v23  ;;  %v946_v1 = vld [vmem:[%s2433_s4 + $0x50] sm:$0xff]  ;;  %v948_v4 = vld [vmem:[%s2433_s4 + $0x60] sm:$0xff]  ;;  %v1817_v5 = vld [vmem:[%s2430_s1 + $0xac] ss:$12 sps:$4 sm:$0xff]  }
  0x2b   : > { %1592 = vmatpush3.bf16.msra.mxu0 %v1780_v12  ;;  %1678 = vmatprep.mubr.msk.bf16.mxu1 %vm633_vm0, %v1807_v26  ;;  %v1814_v3 = vld [vmem:[%s2430_s1 + $0x90] ss:$12 sps:$4 sm:$0xff]   ;;  %v949_v6 = vld [vmem:[%s2433_s4 + $0x68] sm:$0xff]  ;;  %v1820_v10 = vld [vmem:[%s2432_s3] sm:$0xff]  }
  0x2c   : > { %1593 = vmatprep.subr.bf16.mxu0 %v1781_v13  ;;  %353 = vperm.xlu0 %1769, %v319_v41   ;;  %v950_v7 = vld [vmem:[%s2433_s4 + $0x70] sm:$0xff]  ;;  %v951_v8 = vld [vmem:[%s2433_s4 + $0x78] sm:$0xff] }
  0x2d   : > { %358 = vperm.xlu1 %1770, %v320_v42   ;;  %v1819_v9 = vld [vmem:[%s2430_s1 + $0xa8] ss:$12 sps:$4 sm:$0xff]  }
  0x2f   : > { %1594 = vmatpush3.bf16.msra.mxu0 %v1782_v17 }
  0x30   : > { %1595 = vmatprep.subr.bf16.mxu0 %v1783_v18  ;;  %343 = vperm.xlu0 %1769, %v317_v44  }
  0x31   : > { %348 = vperm.xlu1 %1770, %v318_v46  }
  0x32   : > { %1679 = vmatmul.mubr.msk.bf16.gmra.mxu1 %vm633_vm0, %v1808_v32 }
  0x33   : > { %1596 = vmatpush3.bf16.msra.mxu0 %v1784_v19  ;;  %1682 = vmatprep.mubr.msk.bf16.mxu1 %vm633_vm0, %v1815_v34 }
  0x34   : > { %1597 = vmatprep.subr.bf16.mxu0 %v1785_v20  ;;  %333 = vperm.xlu0 %1769, %v315_v47  }
  0x35   : > { %338 = vperm.xlu1 %1770, %v316_v48  }
  0x37   : > { %1598 = vmatpush3.bf16.msra.mxu0 %v1786_v22 }
  0x38   : > { %954 = vperm.xlu0 %1769, %v936_v50  }
  0x39   : > { %959 = vperm.xlu1 %1770, %v937_v52  }
  0x3a   : > { %691 = vmatmul.mubr.bf16.vlgmr.msra.gmra.mxu0 %v1787_v28  ;;  %1683 = vmatmul.mubr.msk.bf16.gmra.mxu1 %vm633_vm0, %v1816_v40 }
  0x3b   : > { %698 = vmatprep.mubr.bf16.mxu0 %v1793_v30  ;;  %1694 = vmatprep.mubr.msk.bf16.mxu1 %vm1072_vm1, %v1820_v10 }
  0x3c   : > { %964 = vperm.xlu0 %1769, %v938_v53  }
  0x3d   : > { %969 = vperm.xlu1 %1770, %v939_v54  }
  0x40   : > { %974 = vperm.xlu0 %1769, %v940_v56  }
  0x41   : > { %979 = vperm.xlu1 %1770, %v941_v58  }
  0x42   : > { %699 = vmatmul.mubr.bf16.gmra.mxu0 %v1795_v36 }
  0x43   : > { %706 = vmatprep.mubr.bf16.mxu0 %v1796_v37 }
  0x44   : > { %984 = vperm.xlu0 %1769, %v942_v59  }
  0x45   : > { %989 = vperm.xlu1 %1770, %v943_v60  }
  0x48   : > { %994 = vperm.xlu0 %1769, %v944_v62  }
  0x49   : > { %999 = vperm.xlu1 %1770, %v945_v0  }
  0x4a   : > { %707 = vmatmul.mubr.bf16.gmra.mxu0 %v1798_v43 }
  0x4b   : > { %714 = vmatprep.mubr.bf16.mxu0 %v1801_v45 }
  0x4c   : > { %1004 = vperm.xlu0 %1769, %v946_v1  }
  0x4d   : > { %1009 = vperm.xlu1 %1770, %v947_v2  }
  0x50   : > { %1014 = vperm.xlu0 %1769, %v948_v4  }
  0x51   : > { %1019 = vperm.xlu1 %1770, %v949_v6  }
  0x52   : > { %715 = vmatmul.mubr.bf16.gmra.mxu0 %v1803_v49 }
  0x53   : > { %722 = vmatprep.mubr.bf16.mxu0 %v1804_v51 }
  0x54   : > { %1024 = vperm.xlu0 %1769, %v950_v7  }
  0x55   : > { %1029 = vperm.xlu1 %1770, %v951_v8  }
  0x5a   : > { %723 = vmatmul.mubr.bf16.gmra.mxu0 %v1806_v55 }
  0x5b   : > { %730 = vmatprep.mubr.bf16.mxu0 %v1809_v57 }
  0x62   : > { %731 = vmatmul.mubr.bf16.gmra.mxu0 %v1811_v61 }
  0x63   : > { %738 = vmatprep.mubr.bf16.mxu0 %v1812_v63 }
  0x6a   : > { %739 = vmatmul.mubr.bf16.gmra.mxu0 %v1814_v3 }
  0x6b   : > { %746 = vmatprep.mubr.bf16.mxu0 %v1817_v5 }
  0x72   : > { %747 = vmatmul.mubr.bf16.gmra.mxu0 %v1819_v9 }
  0x92   : > { %v2253_v18 = vpop.permute.xlu0 %403  ;;  %v2259_v22 = vpop.permute.xlu1 %393 }
  0x96   : > { %v2265_v27 = vpop.permute.xlu0 %408 }
  0x97   : > { %v2269_v30 = vpop.permute.xlu1 %398 }
  0x9b   : > { %v384_v35 = vpop.permute.xlu0 %383 }
  0x9c   : > { %v389_v38 = vpop.permute.xlu1 %388 }
  0x9f   : > { %v374_v42 = vpop.permute.xlu0 %373 }
  0xa0   : > { %v379_v45 = vpop.permute.xlu1 %378 }
  0xa3   : > { %v2293_v49 = vpop.permute.xlu0 %363 }
  0xa4   : > { %v2295_v52 = vpop.permute.xlu1 %368 }
  0xa7   : > { %v2297_v57 = vpop.permute.xlu0 %353 }
  0xa8   : > { %v2299_v60 = vpop.permute.xlu1 %358 }
  0xab   : > { %v344_v4 = vpop.permute.xlu0 %343 }
  0xac   : > { %v349_v9 = vpop.permute.xlu1 %348 }
  0xe2   : > { %v2247_v12 = vpop.f32.mrf.mxu1 }
  0xe4   : > { %v2251_v16 = vpop.f32.mrf.mxu1 }
  0xe6   : > { %v2257_v21 = vpop.f32.mrf.mxu1 }
  0xe8   : > { %v2263_v25 = vpop.f32.mrf.mxu1 }
  0xea   : > { %v2267_v29 = vpop.f32.mrf.mxu1 }
  0xec   : > { %v2273_v34 = vpop.f32.mrf.mxu1 }
  0xee   : > { %v2281_v40 = vpop.f32.mrf.mxu1 }
  0xf0   : > { %v2287_v44 = vpop.f32.mrf.mxu1 }
  0xf2   : > { %v1680_v47 = vpop.f32.mrf.mxu1 }
  0xf4   : > { %v821_v51 = vpop.f32.mrf.mxu1 }
  0xf6   : > { %v1681_v56 = vpop.f32.mrf.mxu1 }
  0xf8   : > { %v824_v0 = vpop.f32.mrf.mxu1 }
  0xfa   : > { %v1599_v11 = vpop.f32.mrf.mxu0  ;;  %v1684_v8 = vpop.f32.mrf.mxu1 }
  0xfc   : > { %v1600_v13 = vpop.f32.mrf.mxu0 }
  0xfd   : > { %v2249_v14 = vadd.f32 %v1600_v13, %v1599_v11 }
  0xfe   : > { %v1602_v15 = vpop.f32.mrf.mxu0 }
 0x100   : > { %v1603_v17 = vpop.f32.mrf.mxu0 }
 0x101   : > { %v2255_v19 = vadd.f32 %v1603_v17, %v1602_v15 }
 0x102   : > { %v1605_v20 = vpop.f32.mrf.mxu0 }
 0x104   : > { %v1606_v23 = vpop.f32.mrf.mxu0 }
 0x105   : > { %v2261_v24 = vadd.f32 %v1606_v23, %v1605_v20  ;;  %v837_v23 = vpop.f32.mrf.mxu1 }
 0x106   : > { %v1608_v26 = vpop.f32.mrf.mxu0 }
 0x108   : > { %v1609_v28 = vpop.f32.mrf.mxu0 }
 0x109   : > { %v2271_v31 = vadd.f32 %v1609_v28, %v1608_v26  ;;  %v334_v26 = vpop.permute.xlu0 %333 }
 0x10a   : > { %v1611_v32 = vpop.f32.mrf.mxu0 }
 0x10c   : > { %v1612_v33 = vpop.f32.mrf.mxu0 }
 0x10d   : > { %v2275_v36 = vadd.f32 %v1612_v33, %v1611_v32 }
 0x10e   : > { %v2277_v37 = vpop.f32.mrf.mxu0 }
 0x110   : > { %v2279_v39 = vpop.f32.mrf.mxu0 }
 0x112   : > { %v2283_v41 = vpop.f32.mrf.mxu0 }
 0x114   : > { %v2285_v43 = vpop.f32.mrf.mxu0 }
 0x116   : > { %v2289_v46 = vpop.f32.mrf.mxu0 }
 0x118   : > { %v2291_v48 = vpop.f32.mrf.mxu0 }
 0x11a   : > { %v1623_v50 = vpop.f32.mrf.mxu0 }
 0x11c   : > { %v1624_v53 = vpop.f32.mrf.mxu0 }
 0x11d   : > { %v1625_v54 = vadd.f32 %v1624_v53, %v1623_v50 }
 0x11e   : > { %v1626_v55 = vpop.f32.mrf.mxu0 }
 0x11f   : > { %v725_v58 = vadd.f32 %v1625_v54, %v374_v42  ;;  %v339_v42 = vpop.permute.xlu1 %338  ;;  %v1685_v54 = vpop.f32.mrf.mxu1 }
 0x120   : > { %v1627_v59 = vpop.f32.mrf.mxu0 }
 0x121   : > { %v1628_v61 = vadd.f32 %v1627_v59, %v1626_v55  ;;  %v822_v62 = vadd.f32 %v821_v51, %v725_v58  ;;  %v693_v51 = vadd.f32 %v2249_v14, %v334_v26  ;;  %v696_v55 = vadd.f32 %v2255_v19, %v339_v42 }
 0x122   : > { %v1629_v63 = vpop.f32.mrf.mxu0  ;;  %v701_v14 = vadd.f32 %v2261_v24, %v344_v4 }
 0x123   : > { %v1455_v1 = vmul.f32 -1.442695, %v822_v62  ;;  %v728_v2 = vadd.f32 %v1628_v61, %v379_v45 }
 0x124   : > { %v1630_v3 = vpop.f32.mrf.mxu0 }
 0x125   : > { %1828 = vpow2.f32 %v1455_v1  ;;  %v1631_v5 = vadd.f32 %v1630_v3, %v1629_v63  ;;  %v825_v6 = vadd.f32 %v824_v0, %v728_v2  ;;  %v840_v63 = vpop.f32.mrf.mxu1  ;;  %v793_v1 = vadd.f32 %v2263_v25, %v696_v55 }
 0x126   : > { %v1632_v7 = vpop.f32.mrf.mxu0 }
 0x127   : > { %v733_v10 = vadd.f32 %v1631_v5, %v384_v35  ;;  %v1456_v11 = vmul.f32 -1.442695, %v825_v6 }
 0x128   : > { %v1633_v13 = vpop.f32.mrf.mxu0 }
 0x129   : > { %v830_v15 = vadd.f32 %v1680_v47, %v733_v10  ;;  %1830 = vpow2.f32 %v1456_v11  ;;  %v1634_v17 = vadd.f32 %v1633_v13, %v1632_v7  ;;  %v798_v11 = vadd.f32 %v2247_v12, %v701_v14 }
 0x12a   : > { %v1635_v20 = vpop.f32.mrf.mxu0 }
 0x12b   : > { %v1457_v28 = vmul.f32 -1.442695, %v830_v15  ;;  %v736_v32 = vadd.f32 %v1634_v17, %v389_v38  ;;  %v790_v38 = vadd.f32 %v2251_v16, %v693_v51 }
 0x12c   : > { %v1636_v33 = vpop.f32.mrf.mxu0 }
 0x12d   : > { %1832 = vpow2.f32 %v1457_v28  ;;  %v833_v45 = vadd.f32 %v1681_v56, %v736_v32  ;;  %v1637_v50 = vadd.f32 %v1636_v33, %v1635_v20  ;;  %v1619_v28 = vadd.f32 %v2285_v43, %v2283_v41 }
 0x12e   : > { %v1638_v53 = vpop.f32.mrf.mxu0 }
 0x12f   : > { %v1458_v35 = vmul.f32 -1.442695, %v833_v45  ;;  %v741_v59 = vadd.f32 %v1637_v50, %v2259_v22  ;;  %v717_v45 = vadd.f32 %v1619_v28, %v2293_v49  ;;  %v709_v49 = vadd.f32 %v2275_v36, %v2297_v57 }
 0x130   : > { %v1639_v47 = vpop.f32.mrf.mxu0 }
 0x131   : > { %1834 = vpow2.f32 %v1458_v35  ;;  %v1640_v58 = vadd.f32 %v1639_v47, %v1638_v53  ;;  %v838_v3 = vadd.f32 %v837_v23, %v741_v59 }
 0x132   : > { %v1829_v61 = vpop.eup %1828  ;;  %v1641_v62 = vpop.f32.mrf.mxu0  ;;  %1836 = vtanh.f32 %v790_v38 }
 0x133   : > { %v884_v0 = vadd.f32 1.0, %v1829_v61  ;;  %v744_v56 = vadd.f32 %v1640_v58, %v2269_v30  ;;  %v704_v30 = vadd.f32 %v2271_v31, %v349_v9  ;;  %v1459_v25 = vmul.f32 -1.442695, %v838_v3 }
 0x134   : > { %v1642_v2 = vpop.f32.mrf.mxu0 }
 0x135   : > { %v1643_v19 = vadd.f32 %v1642_v2, %v1641_v62  ;;  %v841_v5 = vadd.f32 %v840_v63, %v744_v56  ;;  %1838 = vrcp.f32 %v884_v0  ;;  %v806_v62 = vadd.f32 %v2273_v34, %v709_v49 }
 0x136   : > { %v1831_v6 = vpop.eup %1830  ;;  %v1644_v7 = vpop.f32.mrf.mxu0  ;;  %1840 = vtanh.f32 %v793_v1 }
 0x137   : > { %v885_v22 = vadd.f32 1.0, %v1831_v6  ;;  %v749_v16 = vadd.f32 %v1643_v19, %v2253_v18  ;;  %v1460_v10 = vmul.f32 -1.442695, %v841_v5  ;;  %v801_v18 = vadd.f32 %v2257_v21, %v704_v30  ;;  %v1824_v30 = vld [vmem:[%s2432_s3 + $0x20] sm:$0xff]  }
 0x138   : > { %v1645_v24 = vpop.f32.mrf.mxu0 }
 0x139   : > { %1842 = vrcp.f32 %v885_v22  ;;  %v846_v4 = vadd.f32 %v1684_v8, %v749_v16  ;;  %v1646_v13 = vadd.f32 %v1645_v24, %v1644_v7  ;;  %v1616_v8 = vadd.f32 %v2279_v39, %v2277_v37  ;;  %v1821_v16 = vld [vmem:[%s2432_s3 + $0x8] sm:$0xff]  }
 0x13a   : > { %v1833_v15 = vpop.eup %1832  ;;  %1844 = vpow2.f32 %v1460_v10  ;;  %v1822_v10 = vld [vmem:[%s2432_s3 + $0x10] sm:$0xff]   ;;  %v1825_v24 = vld [vmem:[%s2432_s3 + $0x28] sm:$0xff]  }
 0x13b   : > { %v886_v17 = vadd.f32 1.0, %v1833_v15  ;;  %v1461_v20 = vmul.f32 -1.442695, %v846_v4  ;;  %v752_v23 = vadd.f32 %v1646_v13, %v2265_v27  ;;  %1846 = vtanh.f32 %v798_v11  ;;  %v1823_v11 = vld [vmem:[%s2432_s3 + $0x18] sm:$0xff]   ;;  %v955_v13 = vpop.permute.xlu0 %954  ;;  %v960_v15 = vpop.permute.xlu1 %959 }
 0x13c   : > { %1848 = vpow2.f32 %v1459_v25  ;;  %v1622_v27 = vadd.f32 %v2291_v48, %v2289_v46  ;;  %v712_v33 = vadd.f32 %v1616_v8, %v2299_v60  ;;  %v1826_v25 = vld [vmem:[%s2432_s3 + $0x30] sm:$0xff]   ;;  %v1827_v4 = vld [vmem:[%s2432_s3 + $0x38] sm:$0xff]  }
 0x13d   : > { %v849_v26 = vadd.f32 %v1685_v54, %v752_v23  ;;  %1850 = vpow2.f32 %v1461_v20  ;;  %v814_v54 = vadd.f32 %v2267_v29, %v717_v45  ;;  %v1573_v23 = vld [vmem:[%s2055_s15 + $0x8] sm:$0xff]  }
 0x13e   : > { %v1835_v12 = vpop.eup %1834  ;;  %1852 = vrcp.f32 %v886_v17  ;;  %v720_v51 = vadd.f32 %v1622_v27, %v2295_v52  ;;  %v809_v41 = vadd.f32 %v2287_v44, %v712_v33 }
 0x13f   : > { %v887_v31 = vadd.f32 1.0, %v1835_v12  ;;  %v1462_v9 = vmul.f32 -1.442695, %v849_v26  ;;  %1854 = vtanh.f32 %v801_v18  ;;  %v1837_v21 = vpop.eup %1836  ;;  %v965_v17 = vpop.permute.xlu0 %964  ;;  %v1518_v12 = vld [vmem:[%s2055_s15] sm:$0xff]  }
 0x140   : > { %v817_v35 = vadd.f32 %v2281_v40, %v720_v51  ;;  %v970_v20 = vpop.permute.xlu1 %969  ;;  %v1519_v28 = vunpack.c.l.bf16 %v1518_v12  ;;  %v1520_v27 = vunpack.c.h.bf16 %v1518_v12 }
 0x141   : > { %1856 = vrcp.f32 %v887_v31  ;;  %v1523_v31 = vunpack.c.l.bf16 %v1573_v23 }
 0x142   : > { %1858 = vpow2.f32 %v1462_v9  ;;  %v1839_v32 = vpop.eup %1838  ;;  %v1524_v9 = vunpack.c.h.bf16 %v1573_v23 }
 0x143   : > { %v1841_v42 = vpop.eup %1840  ;;  %v908_v53 = vmul.f32 %v1839_v32, %v1837_v21  ;;  %1860 = vtanh.f32 %v809_v41  ;;  %v975_v18 = vpop.permute.xlu0 %974 }
 0x144   : > { %1862 = vtanh.f32 %v814_v54  ;;  %v980_v26 = vpop.permute.xlu1 %979  ;;  %v1213_v45 = vmul.f32 0.70710677, %v1524_v9  ;;  %v1574_v54 = vld [vmem:[%s2055_s15 + $0x10] sm:$0xff]  }
 0x145   : > { %1864 = vtanh.f32 %v817_v35 }
 0x146   : > { %v1843_v50 = vpop.eup %1842 }
 0x147   : > { %v909_v37 = vmul.f32 %v1843_v50, %v1841_v42  ;;  %v1845_v39 = vpop.eup %1844  ;;  %v985_v32 = vpop.permute.xlu0 %984  ;;  %v1212_v42 = vmul.f32 0.70710677, %v1523_v31  ;;  %v1575_v50 = vld [vmem:[%s2055_s15 + $0x18] sm:$0xff]   ;;  %s1516_s15 = sshll.u32 %s1944_s21, 10  ;;  %s2384_s21 = scalar_lea.sflag [#allocation3], %s237_s13 }
 0x148   : > { %v1847_v43 = vpop.eup %1846  ;;  %v889_v60 = vadd.f32 1.0, %v1845_v39  ;;  %v990_v51 = vpop.permute.xlu1 %989  ;;  %v1210_v39 = vmul.f32 0.70710677, %v1519_v28  ;;  %s2376_s27 = scalar_lea.hbm %s2434_s5, %s1516_s15 }
 0x149   : > { %v932_v46 = vpack.c.bf16 %v909_v37, %v908_v53  ;;  %v1849_v48 = vpop.eup %1848 }
 0x14a   : > { %v1851_v55 = vpop.eup %1850  ;;  %v888_v59 = vadd.f32 1.0, %v1849_v48  ;;  %1866 = vrcp.f32 %v889_v60  ;;  %v1531_v48 = vunpack.c.l.bf16 %v1575_v50 }
 0x14b   : > { %v1853_v47 = vpop.eup %1852  ;;  %v890_v52 = vadd.f32 1.0, %v1851_v55 }
 0x14c   : > { %v1855_v58 = vpop.eup %1854  ;;  %v910_v29 = vmul.f32 %v1853_v47, %v1847_v43  ;;  %v1211_v43 = vmul.f32 0.70710677, %v1520_v27  ;;  %v1532_v47 = vunpack.c.h.bf16 %v1575_v50 }
 0x14d   : > { %1868 = vrcp.f32 %v890_v52  ;;  %v1527_v52 = vunpack.c.l.bf16 %v1574_v54 }
 0x14e   : > { %v1857_v61 = vpop.eup %1856  ;;  %1870 = vrcp.f32 %v888_v59 }
 0x14f   : > { %v1859_v44 = vpop.eup %1858  ;;  %v911_v38 = vmul.f32 %v1857_v61, %v1855_v58  ;;  %v995_v58 = vpop.permute.xlu0 %994 }
 0x150   : > { %v891_v40 = vadd.f32 1.0, %v1859_v44  ;;  %v1861_v36 = vpop.eup %1860 }
 0x151   : > { %v933_v63 = vpack.c.bf16 %v911_v38, %v910_v29  ;;  %v1863_v57 = vpop.eup %1862  ;;  %v1528_v29 = vunpack.c.h.bf16 %v1574_v54  ;;  %v1000_v38 = vpop.permute.xlu1 %999 }
 0x152   : > { %1872 = vrcp.f32 %v891_v40  ;;  %v1865_v0 = vpop.eup %1864 }
 0x153   : > { %1874 = vtanh.f32 %v806_v62 }
 0x157   : > { %v1867_v56 = vpop.eup %1866 }
 0x158   : > { %v913_v5 = vmul.f32 %v1867_v56, %v1861_v36  ;;  %v1216_v36 = vmul.f32 0.70710677, %v1531_v48 }
 0x15a   : > { %v1869_v14 = vpop.eup %1868 }
 0x15b   : > { %v1871_v1 = vpop.eup %1870  ;;  %v914_v3 = vmul.f32 %v1869_v14, %v1863_v57  ;;  %v1217_v57 = vmul.f32 0.70710677, %v1532_v47  ;;  %v1214_v14 = vmul.f32 0.70710677, %v1527_v52 }
 0x15f   : > { %v1873_v2 = vpop.eup %1872 }
 0x160   : > { %v915_v19 = vmul.f32 %v1873_v2, %v1865_v0  ;;  %v1875_v6 = vpop.eup %1874  ;;  %v1215_v2 = vmul.f32 0.70710677, %v1528_v29 }
 0x161   : > { %v912_v22 = vmul.f32 %v1875_v6, %v1871_v1 }
 0x162   : > { %v935_v7 = vpack.c.bf16 %v915_v19, %v914_v3  ;;  %v1005_v19 = vpop.permute.xlu0 %1004 }
 0x163   : > { %v934_v34 = vpack.c.bf16 %v913_v5, %v912_v22  ;;  %v1010_v22 = vpop.permute.xlu1 %1009 }
 0x164   : > { %1686 = vmatprep.subr.bf16.mxu1 %v935_v7 }
 0x165   : > { %1687 = vmatpush3.bf16.msra.mxu1 %v935_v7 }
 0x166   : > { %1688 = vmatprep.subr.bf16.mxu1 %v934_v34 }
 0x169   : > { %1689 = vmatpush3.bf16.msra.mxu1 %v934_v34 }
 0x16a   : > { %1690 = vmatprep.subr.bf16.mxu1 %v933_v63 }
 0x16d   : > { %1691 = vmatpush3.bf16.msra.mxu1 %v933_v63 }
 0x16e   : > { %1692 = vmatprep.subr.bf16.mxu1 %v932_v46 }
 0x171   : > { %1693 = vmatpush3.bf16.msra.mxu1 %v932_v46 }
 0x174   : > { %1695 = vmatmul.mubr.msk.bf16.vlgmr.msra.gmra.mxu1 %vm1072_vm1, %v1821_v16 }
 0x175   : > { %1698 = vmatprep.mubr.msk.bf16.mxu1 %vm1072_vm1, %v1822_v10 }
 0x17c   : > { %1699 = vmatmul.mubr.msk.bf16.gmra.mxu1 %vm1072_vm1, %v1823_v11 }
 0x17d   : > { %1702 = vmatprep.mubr.msk.bf16.mxu1 %vm1072_vm1, %v1824_v30 }
 0x184   : > { %1703 = vmatmul.mubr.msk.bf16.gmra.mxu1 %vm1072_vm1, %v1825_v24 }
 0x185   : > { %1706 = vmatprep.mubr.msk.bf16.mxu1 %vm1072_vm1, %v1826_v25 }
 0x18c   : > { %1707 = vmatmul.mubr.msk.bf16.gmra.mxu1 %vm1072_vm1, %v1827_v4  ;;  %v1015_v4 = vpop.permute.xlu0 %1014 }
 0x234   : > { %v1696_v8 = vpop.f32.mrf.mxu1 }
 0x235   : > { %v1140_v33 = vadd.f32 %v1696_v8, %v965_v17  ;;  %v1020_v17 = vpop.permute.xlu1 %1019  ;;  %v1025_v8 = vpop.permute.xlu0 %1024 }
 0x236   : > { %v1131_v21 = vpop.f32.mrf.mxu1 }
 0x237   : > { %v1132_v37 = vadd.f32 %v1131_v21, %v955_v13  ;;  %v1220_v35 = vadd.f32 %v1212_v42, %v1140_v33 }
 0x238   : > { %v1697_v53 = vpop.f32.mrf.mxu1 }
 0x239   : > { %v1143_v41 = vadd.f32 %v1697_v53, %v970_v20  ;;  %v1218_v59 = vadd.f32 %v1210_v39, %v1132_v37  ;;  %v1030_v28 = vpop.permute.xlu1 %1029 }
 0x23a   : > { %v1134_v46 = vpop.f32.mrf.mxu1 }
 0x23b   : > { %v1221_v55 = vadd.f32 %v1213_v45, %v1143_v41  ;;  %v1135_v60 = vadd.f32 %v1134_v46, %v960_v15 }
 0x23c   : > { %v1700_v49 = vpop.f32.mrf.mxu1 }
 0x23d   : > { %v1541_v61 = vpack.c.bf16 %v1221_v55, %v1220_v35  ;;  %v1219_v44 = vadd.f32 %v1211_v43, %v1135_v60  ;;  %v1156_v63 = vadd.f32 %v1700_v49, %v985_v32 }
 0x23e   : > { %v1147_v62 = vpop.f32.mrf.mxu1 }
 0x23f   : > { %1576 = vst [vmem:[%s2363_s16 + $0x8] sm:$0xff] %v1541_v61   ;;  %v1536_v40 = vpack.c.bf16 %v1219_v44, %v1218_v59  ;;  %v1148_v56 = vadd.f32 %v1147_v62, %v975_v18  ;;  %v1224_v5 = vadd.f32 %v1216_v36, %v1156_v63 }
 0x240   : > { %v1701_v0 = vpop.f32.mrf.mxu1 }
 0x241   : > { %1537 = vst [vmem:[%s2363_s16] sm:$0xff] %v1536_v40   ;;  %v1159_v1 = vadd.f32 %v1701_v0, %v990_v51  ;;  %v1222_v16 = vadd.f32 %v1214_v14, %v1148_v56 }
 0x242   : > { %v1150_v3 = vpop.f32.mrf.mxu1 }
 0x243   : > { %v1225_v6 = vadd.f32 %v1217_v57, %v1159_v1  ;;  %v1151_v7 = vadd.f32 %v1150_v3, %v980_v26 }
 0x244   : > { %v1704_v34 = vpop.f32.mrf.mxu1 }
 0x245   : > { %v1551_v10 = vpack.c.bf16 %v1225_v6, %v1224_v5  ;;  %v1223_v11 = vadd.f32 %v1215_v2, %v1151_v7  ;;  %v1172_v13 = vadd.f32 %v1704_v34, %v1005_v19 }
 0x246   : > { %v1163_v30 = vpop.f32.mrf.mxu1 }
 0x247   : > { %1578 = vst [vmem:[%s2363_s16 + $0x18] sm:$0xff] %v1551_v10   ;;  %v1546_v24 = vpack.c.bf16 %v1223_v11, %v1222_v16  ;;  %v1164_v23 = vadd.f32 %v1163_v30, %v995_v58 }
 0x248   : > { %v1705_v25 = vpop.f32.mrf.mxu1 }
 0x249   : > { %1577 = vst [vmem:[%s2363_s16 + $0x10] sm:$0xff] %v1546_v24   ;;  %v1175_v15 = vadd.f32 %v1705_v25, %v1010_v22 }
 0x24a   : > { %v1166_v20 = vpop.f32.mrf.mxu1 }
 0x24b   : > { %v1561_v18 = vpack.c.bf16 %v1175_v15, %v1172_v13  ;;  %v1167_v26 = vadd.f32 %v1166_v20, %v1000_v38 }
 0x24c   : > { %v1708_v12 = vpop.f32.mrf.mxu1 }
 0x24d   : > { %1580 = vst [vmem:[%s2363_s16 + $0x28] sm:$0xff] %v1561_v18   ;;  %v1556_v31 = vpack.c.bf16 %v1167_v26, %v1164_v23  ;;  %v1188_v21 = vadd.f32 %v1708_v12, %v1025_v8 }
 0x24e   : > { %v1179_v9 = vpop.f32.mrf.mxu1 }
 0x24f   : > { %1579 = vst [vmem:[%s2363_s16 + $0x20] sm:$0xff] %v1556_v31   ;;  %v1180_v42 = vadd.f32 %v1179_v9, %v1015_v4 }
 0x250   : > { %v1709_v27 = vpop.f32.mrf.mxu1 }
 0x251   : > { %v1191_v32 = vadd.f32 %v1709_v27, %v1030_v28 }
 0x252   : > { %v1182_v33 = vpop.f32.mrf.mxu1 }
 0x253   : > { %v1571_v45 = vpack.c.bf16 %v1191_v32, %v1188_v21  ;;  %v1183_v50 = vadd.f32 %v1182_v33, %v1020_v17 }
 0x255   : > { %1582 = vst [vmem:[%s2363_s16 + $0x38] sm:$0xff] %v1571_v45   ;;  %v1566_v51 = vpack.c.bf16 %v1183_v50, %v1180_v42 }
 0x257   : > { %1581 = vst [vmem:[%s2363_s16 + $0x30] sm:$0xff] %v1566_v51  }
 0x258   : > { %1889 = shalt.err (!%p1886_p5)
}
 0x259   : > { %s1890_s10 = scalar_lea.hbm %s2376_s27, 1024  ;;  %s1894_s13 = scalar_lea.hbm %s2434_s5, 2048 }
 0x25a   : > { %p1891_p6 = scmp.ne.s32.totalorder %s2376_s27, %s1890_s10  ;;  %p1895_p10 = scmp.lt.s32.totalorder %s2376_s27, %s2434_s5 }
 0x25b   : > { %p1896_p11 = scmp.lt.s32.totalorder %s1894_s13, %s1890_s10 }
 0x25c   : > { %p1892_p7 = pnand %p1891_p6, %p2028_p4 }
 0x25d   : > { %p1897_p12 = por %p1896_p11, %p1895_p10 }
 0x25e   : > { %p1893_p9 = pneg %p1892_p7 }
 0x260   : > { %p1898_p13 = pnand %p1897_p12, %p1893_p9 }
 0x262   : > { %1901 = shalt.err (!%p1898_p13)
}
 0x263   : > { %s1956_s15 = smov 64   ;;  %s1957_s24 = smov 4  }
 0x264   : > { %1711 = dma.vmem_to_hbm [thread:$0]  (%p2028_p4), %s2378_s17, 1024, %s2376_s27, %s2384_s21, %s1956_s15, %s1956_s15, %s1957_s24  }
 0x265 PF: > { %p1717_p0 = scmp.ge.s32.totalorder %s1952_s23, 2  ;;  %s1336_s25 = sand.u32 1, %s1932_s18  }
 0x266   : > { %s1337_s29 = scalar_lea.sflag [#allocation3], %s1336_s25 }
 0x267   : > { %p1714_p1 = pnand %p1717_p0, %p2035_p8 }
 0x269   : > { %p1715_p2 = pneg %p1714_p1 }
 0x26b   : > { %1927 = dma.done.wait (%p1715_p2), %s1337_s29, 1024  }
 0x26c   : > { %1929 = vsyncadd (%p1715_p2), %s1337_s29, 4294966272  ;;  %s18_s23 = sadd.s32 1, %s1952_s23   ;;  %s2437_s18 = smov %s1936_s19 }
 0x26d   : > { %p15_p3 = scmp.ge.s32.totalorder %s18_s23, 4   ;;  %s2438_s19 = smov %s1940_s20 }
 0x26e   : > { %s2439_s20 = smov %s2041_s6  ;;  %s2440_s21 = smov %s1948_s22 }
 0x26f   : > { %s2441_s22 = smov %s2443_s26  ;;  %17 = sbr.rel (!%p15_p3) target bundleno = 4 (0x4), region = 75 }
 0x274   :  { %1342 = vsyncpa [#allocation3], 1 }
 0x275   :  { %1344 = vsyncpa [#allocation3 + $0x1], 1 }

</bundles_post_ra>
